<compile_context>
chip_gen: v7x
topology: tpu7x:2x2x1
jax: 0.10.0
libtpu: 0.0.40
codegen_flags: <defaults>
</compile_context>

<pallas_src>
import functools

import jax
import jax.numpy as jnp
from jax.experimental import pallas as pl
from jax.experimental.pallas import tpu as pltpu


def _round_up(x, m):
    return ((x + m - 1) // m) * m


def _choose_tile_b(B, E, N, max_tile_b):
    """Batch tile: multiple of 8, VMEM-budgeted, and >= 2 grid steps if possible."""
    B8 = _round_up(max(B, 1), 8)
    row_bytes = 4 * (N + 2) * E                      # f32 bytes per batch row
    cap = max(8, ((10 << 20) // row_bytes) // 8 * 8)  # ~10 MiB of inputs per tile
    tb = min(B8, max_tile_b, cap)
    if B8 >= 16:
        # Keep at least two grid steps so the "parallel" axis can split across
        # the two TensorCores on v7x (and the pipeline has something to overlap).
        half = _round_up((B8 + 1) // 2, 8)
        tb = min(tb, half)
    return max(tb, 8)


def _neg_sampling_loss_kernel(in_ref, outv_ref, noise_ref, part_ref, *,
                              n_noise, embed, tile_b, batch):
    x = in_ref[...]                                   # (TB, E) f32
    n_terms = n_noise + 1

    # Column-selector template: routes each score to its own lane and applies
    # its sign (+1 for the positive term, -1 for every noise term) inside the
    # MXU matmul, so the reductions over E never touch the XLU.
    col = jax.lax.broadcasted_iota(jnp.int32, (embed, n_terms), 1)

    # Positive term -> lane 0, sign +1.
    sel = jnp.where(col == 0, 1.0, 0.0).astype(jnp.float32)
    z = jnp.dot(outv_ref[...] * x, sel, preferred_element_type=jnp.float32)

    # Noise terms -> lanes 1..N, sign -1. Static lane-aligned slices of the
    # flattened (TB, N*E) noise block; live temporaries stay at (TB, E).
    for n in range(n_noise):
        sel = jnp.where(col == n + 1, -1.0, 0.0).astype(jnp.float32)
        prod = noise_ref[:, pl.ds(n * embed, embed)] * x
        z = z + jnp.dot(prod, sel, preferred_element_type=jnp.float32)

    # Numerically stable log(sigmoid(z)) on the lane-packed (TB, N+1) scores:
    # log(sigmoid(v)) = min(v, 0) - log(1 + exp(-|v|)).
    logsig = jnp.minimum(z, 0.0) - jnp.log(1.0 + jnp.exp(-jnp.abs(z)))

    # Mask padded rows of the last tile, then finish the batch reduction here:
    # the output per grid step is a tiny lane-dense (1, 1, N+1) partial sum.
    row = (pl.program_id(0) * tile_b
           + jax.lax.broadcasted_iota(jnp.int32, (tile_b, n_terms), 0))
    logsig = jnp.where(row < batch, logsig, 0.0)
    part_ref[0] = jnp.sum(logsig, axis=0, keepdims=True)   # (1, N+1)


def negative_sampling_loss(input_vectors, output_vectors, noise_vectors,
                           *, max_tile_b=2048):
    B, E = input_vectors.shape
    _, N, _ = noise_vectors.shape

    input_vectors = input_vectors.astype(jnp.float32)
    output_vectors = output_vectors.astype(jnp.float32)
    # Free reshape (trailing dims contiguous): flat noise gives the kernel clean
    # lane-aligned slices and simpler, denser DMA descriptors.
    noise_flat = noise_vectors.astype(jnp.float32).reshape(B, N * E)

    TB = _choose_tile_b(B, E, N, max_tile_b)
    B_pad = _round_up(B, TB)
    if B_pad != B:
        pad = B_pad - B
        input_vectors = jnp.pad(input_vectors, ((0, pad), (0, 0)))
        output_vectors = jnp.pad(output_vectors, ((0, pad), (0, 0)))
        noise_flat = jnp.pad(noise_flat, ((0, pad), (0, 0)))
    num_tiles = B_pad // TB

    # Double-buffered input footprint is ~2x tile_in_bytes; budget ~2.5x plus
    # headroom, capped well below v7x's 64 MiB per-core VMEM.
    tile_in_bytes = 4 * TB * (N + 2) * E
    vmem_limit = int(min(56 << 20,
                         max(24 << 20, int(2.5 * tile_in_bytes) + (2 << 20))))

    partials = pl.pallas_call(
        functools.partial(_neg_sampling_loss_kernel,
                          n_noise=N, embed=E, tile_b=TB, batch=B),
        out_shape=jax.ShapeDtypeStruct((num_tiles, 1, N + 1), jnp.float32),
        grid=(num_tiles,),
        in_specs=[
            pl.BlockSpec((TB, E), lambda i: (i, 0)),
            pl.BlockSpec((TB, E), lambda i: (i, 0)),
            # TODO(synk): if a profile shows exposed DMA at tile boundaries,
            # add pipeline_mode=pl.Buffered(3) on this (dominant-byte) stream.
            pl.BlockSpec((TB, N * E), lambda i: (i, 0)),
        ],
        out_specs=pl.BlockSpec((1, 1, N + 1), lambda i: (i, 0, 0)),
        compiler_params=pltpu.CompilerParams(
            dimension_semantics=("parallel",),     # independent tiles: megacore-safe
            vmem_limit_bytes=vmem_limit,
        ),
        cost_estimate=pl.CostEstimate(
            flops=4 * B_pad * (N + 1) * E,
            transcendentals=2 * B_pad * (N + 1),
            bytes_accessed=4 * (B_pad * (N + 2) * E + num_tiles * (N + 1)),
        ),
    )(input_vectors, output_vectors, noise_flat)

    # Padded rows are masked in-kernel; only the scalar mean remains here.
    return -(jnp.sum(partials) / B)


def _reference(input_vectors, output_vectors, noise_vectors):
    pos = jnp.sum(output_vectors * input_vectors, axis=-1)
    out_loss = jnp.log(jax.nn.sigmoid(pos))
    neg = -jnp.einsum("bne,be->bn", noise_vectors, input_vectors)
    noise_loss = jnp.sum(jnp.log(jax.nn.sigmoid(neg)), axis=-1)
    return -jnp.mean(out_loss + noise_loss)


if __name__ == "__main__":
    B, E, N = 8, 128, 8  # batch, embed size, number of noise samples

    key = jax.random.PRNGKey(0)
    k1, k2, k3 = jax.random.split(key, 3)
    input_vectors = jax.random.normal(k1, (B, E), dtype=jnp.float32) * 0.1
    output_vectors = jax.random.normal(k2, (B, E), dtype=jnp.float32) * 0.1
    noise_vectors = jax.random.normal(k3, (B, N, E), dtype=jnp.float32) * 0.1

    loss = negative_sampling_loss(input_vectors, output_vectors, noise_vectors)
    loss = jax.block_until_ready(loss)

    ref = _reference(input_vectors, output_vectors, noise_vectors)
    assert jnp.allclose(loss, ref, atol=1e-5, rtol=1e-5), (loss, ref)

    print("KERNEL_OK")
</pallas_src>

<mosaic_0001>
module attributes {stable_mosaic.version = 11 : i64} {
  func.func @_neg_sampling_loss_kernel(%arg0: i32, %arg1: memref<8x128xf32, #tpu.memory_space<vmem>>, %arg2: memref<8x128xf32, #tpu.memory_space<vmem>>, %arg3: memref<8x1024xf32, #tpu.memory_space<vmem>>, %arg4: memref<1x1x9xf32, #tpu.memory_space<vmem>>) attributes {dimension_semantics = [#tpu.dimension_semantics<parallel>], iteration_bounds = array<i64: 1>, scalar_prefetch = 0 : i64, scratch_operands = 0 : i64, tpu.core_type = #tpu.core_type<tc>, window_params = [{transform_indices = @transform_0, window_bounds = array<i64: 8, 128>}, {transform_indices = @transform_1, window_bounds = array<i64: 8, 128>}, {transform_indices = @transform_2, window_bounds = array<i64: 8, 1024>}, {transform_indices = @transform_3, window_bounds = array<i64: 1, 1, 9>}]} {
    %c0 = arith.constant 0 : index
    %c0_0 = arith.constant 0 : index
    %0 = vector.load %arg1[%c0, %c0_0] : memref<8x128xf32, #tpu.memory_space<vmem>>, vector<8x128xf32>
    %1 = tpu.iota {dimensions = array<i32: 1>} : vector<128x9xi32>
    %c0_i32 = arith.constant 0 : i32
    %2 = vector.broadcast %c0_i32 : i32 to vector<128x9xi32>
    %3 = arith.cmpi eq, %1, %2 : vector<128x9xi32>
    %cst = arith.constant 1.000000e+00 : f32
    %cst_1 = arith.constant 0.000000e+00 : f32
    %4 = vector.broadcast %cst : f32 to vector<128x9xf32>
    %5 = vector.broadcast %cst_1 : f32 to vector<128x9xf32>
    %6 = arith.select %3, %4, %5 : vector<128x9xi1>, vector<128x9xf32>
    %c0_2 = arith.constant 0 : index
    %c0_3 = arith.constant 0 : index
    %7 = vector.load %arg2[%c0_2, %c0_3] : memref<8x128xf32, #tpu.memory_space<vmem>>, vector<8x128xf32>
    %8 = arith.mulf %7, %0 : vector<8x128xf32>
    %cst_4 = arith.constant dense<0.000000e+00> : vector<8x9xf32>
    %9 = tpu.matmul %8, %6, %cst_4 {dimension_numbers = #tpu.dot_dimension_numbers<[1], [0], [0], [1], [0, 0, 1, 1], [], []>} : vector<8x128xf32>, vector<128x9xf32>, vector<8x9xf32> -> vector<8x9xf32>
    %c1_i32 = arith.constant 1 : i32
    %10 = vector.broadcast %c1_i32 : i32 to vector<128x9xi32>
    %11 = arith.cmpi eq, %1, %10 : vector<128x9xi32>
    %cst_5 = arith.constant -1.000000e+00 : f32
    %cst_6 = arith.constant 0.000000e+00 : f32
    %12 = vector.broadcast %cst_5 : f32 to vector<128x9xf32>
    %13 = vector.broadcast %cst_6 : f32 to vector<128x9xf32>
    %14 = arith.select %11, %12, %13 : vector<128x9xi1>, vector<128x9xf32>
    %c0_7 = arith.constant 0 : index
    %c0_8 = arith.constant 0 : index
    %15 = vector.load %arg3[%c0_7, %c0_8] : memref<8x1024xf32, #tpu.memory_space<vmem>>, vector<8x128xf32>
    %16 = arith.mulf %15, %0 : vector<8x128xf32>
    %cst_9 = arith.constant dense<0.000000e+00> : vector<8x9xf32>
    %17 = tpu.matmul %16, %14, %cst_9 {dimension_numbers = #tpu.dot_dimension_numbers<[1], [0], [0], [1], [0, 0, 1, 1], [], []>} : vector<8x128xf32>, vector<128x9xf32>, vector<8x9xf32> -> vector<8x9xf32>
    %18 = arith.addf %9, %17 : vector<8x9xf32>
    %c2_i32 = arith.constant 2 : i32
    %19 = vector.broadcast %c2_i32 : i32 to vector<128x9xi32>
    %20 = arith.cmpi eq, %1, %19 : vector<128x9xi32>
    %cst_10 = arith.constant -1.000000e+00 : f32
    %cst_11 = arith.constant 0.000000e+00 : f32
    %21 = vector.broadcast %cst_10 : f32 to vector<128x9xf32>
    %22 = vector.broadcast %cst_11 : f32 to vector<128x9xf32>
    %23 = arith.select %20, %21, %22 : vector<128x9xi1>, vector<128x9xf32>
    %c0_12 = arith.constant 0 : index
    %c128 = arith.constant 128 : index
    %24 = vector.load %arg3[%c0_12, %c128] : memref<8x1024xf32, #tpu.memory_space<vmem>>, vector<8x128xf32>
    %25 = arith.mulf %24, %0 : vector<8x128xf32>
    %cst_13 = arith.constant dense<0.000000e+00> : vector<8x9xf32>
    %26 = tpu.matmul %25, %23, %cst_13 {dimension_numbers = #tpu.dot_dimension_numbers<[1], [0], [0], [1], [0, 0, 1, 1], [], []>} : vector<8x128xf32>, vector<128x9xf32>, vector<8x9xf32> -> vector<8x9xf32>
    %27 = arith.addf %18, %26 : vector<8x9xf32>
    %c3_i32 = arith.constant 3 : i32
    %28 = vector.broadcast %c3_i32 : i32 to vector<128x9xi32>
    %29 = arith.cmpi eq, %1, %28 : vector<128x9xi32>
    %cst_14 = arith.constant -1.000000e+00 : f32
    %cst_15 = arith.constant 0.000000e+00 : f32
    %30 = vector.broadcast %cst_14 : f32 to vector<128x9xf32>
    %31 = vector.broadcast %cst_15 : f32 to vector<128x9xf32>
    %32 = arith.select %29, %30, %31 : vector<128x9xi1>, vector<128x9xf32>
    %c0_16 = arith.constant 0 : index
    %c256 = arith.constant 256 : index
    %33 = vector.load %arg3[%c0_16, %c256] : memref<8x1024xf32, #tpu.memory_space<vmem>>, vector<8x128xf32>
    %34 = arith.mulf %33, %0 : vector<8x128xf32>
    %cst_17 = arith.constant dense<0.000000e+00> : vector<8x9xf32>
    %35 = tpu.matmul %34, %32, %cst_17 {dimension_numbers = #tpu.dot_dimension_numbers<[1], [0], [0], [1], [0, 0, 1, 1], [], []>} : vector<8x128xf32>, vector<128x9xf32>, vector<8x9xf32> -> vector<8x9xf32>
    %36 = arith.addf %27, %35 : vector<8x9xf32>
    %c4_i32 = arith.constant 4 : i32
    %37 = vector.broadcast %c4_i32 : i32 to vector<128x9xi32>
    %38 = arith.cmpi eq, %1, %37 : vector<128x9xi32>
    %cst_18 = arith.constant -1.000000e+00 : f32
    %cst_19 = arith.constant 0.000000e+00 : f32
    %39 = vector.broadcast %cst_18 : f32 to vector<128x9xf32>
    %40 = vector.broadcast %cst_19 : f32 to vector<128x9xf32>
    %41 = arith.select %38, %39, %40 : vector<128x9xi1>, vector<128x9xf32>
    %c0_20 = arith.constant 0 : index
    %c384 = arith.constant 384 : index
    %42 = vector.load %arg3[%c0_20, %c384] : memref<8x1024xf32, #tpu.memory_space<vmem>>, vector<8x128xf32>
    %43 = arith.mulf %42, %0 : vector<8x128xf32>
    %cst_21 = arith.constant dense<0.000000e+00> : vector<8x9xf32>
    %44 = tpu.matmul %43, %41, %cst_21 {dimension_numbers = #tpu.dot_dimension_numbers<[1], [0], [0], [1], [0, 0, 1, 1], [], []>} : vector<8x128xf32>, vector<128x9xf32>, vector<8x9xf32> -> vector<8x9xf32>
    %45 = arith.addf %36, %44 : vector<8x9xf32>
    %c5_i32 = arith.constant 5 : i32
    %46 = vector.broadcast %c5_i32 : i32 to vector<128x9xi32>
    %47 = arith.cmpi eq, %1, %46 : vector<128x9xi32>
    %cst_22 = arith.constant -1.000000e+00 : f32
    %cst_23 = arith.constant 0.000000e+00 : f32
    %48 = vector.broadcast %cst_22 : f32 to vector<128x9xf32>
    %49 = vector.broadcast %cst_23 : f32 to vector<128x9xf32>
    %50 = arith.select %47, %48, %49 : vector<128x9xi1>, vector<128x9xf32>
    %c0_24 = arith.constant 0 : index
    %c512 = arith.constant 512 : index
    %51 = vector.load %arg3[%c0_24, %c512] : memref<8x1024xf32, #tpu.memory_space<vmem>>, vector<8x128xf32>
    %52 = arith.mulf %51, %0 : vector<8x128xf32>
    %cst_25 = arith.constant dense<0.000000e+00> : vector<8x9xf32>
    %53 = tpu.matmul %52, %50, %cst_25 {dimension_numbers = #tpu.dot_dimension_numbers<[1], [0], [0], [1], [0, 0, 1, 1], [], []>} : vector<8x128xf32>, vector<128x9xf32>, vector<8x9xf32> -> vector<8x9xf32>
    %54 = arith.addf %45, %53 : vector<8x9xf32>
    %c6_i32 = arith.constant 6 : i32
    %55 = vector.broadcast %c6_i32 : i32 to vector<128x9xi32>
    %56 = arith.cmpi eq, %1, %55 : vector<128x9xi32>
    %cst_26 = arith.constant -1.000000e+00 : f32
    %cst_27 = arith.constant 0.000000e+00 : f32
    %57 = vector.broadcast %cst_26 : f32 to vector<128x9xf32>
    %58 = vector.broadcast %cst_27 : f32 to vector<128x9xf32>
    %59 = arith.select %56, %57, %58 : vector<128x9xi1>, vector<128x9xf32>
    %c0_28 = arith.constant 0 : index
    %c640 = arith.constant 640 : index
    %60 = vector.load %arg3[%c0_28, %c640] : memref<8x1024xf32, #tpu.memory_space<vmem>>, vector<8x128xf32>
    %61 = arith.mulf %60, %0 : vector<8x128xf32>
    %cst_29 = arith.constant dense<0.000000e+00> : vector<8x9xf32>
    %62 = tpu.matmul %61, %59, %cst_29 {dimension_numbers = #tpu.dot_dimension_numbers<[1], [0], [0], [1], [0, 0, 1, 1], [], []>} : vector<8x128xf32>, vector<128x9xf32>, vector<8x9xf32> -> vector<8x9xf32>
    %63 = arith.addf %54, %62 : vector<8x9xf32>
    %c7_i32 = arith.constant 7 : i32
    %64 = vector.broadcast %c7_i32 : i32 to vector<128x9xi32>
    %65 = arith.cmpi eq, %1, %64 : vector<128x9xi32>
    %cst_30 = arith.constant -1.000000e+00 : f32
    %cst_31 = arith.constant 0.000000e+00 : f32
    %66 = vector.broadcast %cst_30 : f32 to vector<128x9xf32>
    %67 = vector.broadcast %cst_31 : f32 to vector<128x9xf32>
    %68 = arith.select %65, %66, %67 : vector<128x9xi1>, vector<128x9xf32>
    %c0_32 = arith.constant 0 : index
    %c768 = arith.constant 768 : index
    %69 = vector.load %arg3[%c0_32, %c768] : memref<8x1024xf32, #tpu.memory_space<vmem>>, vector<8x128xf32>
    %70 = arith.mulf %69, %0 : vector<8x128xf32>
    %cst_33 = arith.constant dense<0.000000e+00> : vector<8x9xf32>
    %71 = tpu.matmul %70, %68, %cst_33 {dimension_numbers = #tpu.dot_dimension_numbers<[1], [0], [0], [1], [0, 0, 1, 1], [], []>} : vector<8x128xf32>, vector<128x9xf32>, vector<8x9xf32> -> vector<8x9xf32>
    %72 = arith.addf %63, %71 : vector<8x9xf32>
    %c8_i32 = arith.constant 8 : i32
    %73 = vector.broadcast %c8_i32 : i32 to vector<128x9xi32>
    %74 = arith.cmpi eq, %1, %73 : vector<128x9xi32>
    %cst_34 = arith.constant -1.000000e+00 : f32
    %cst_35 = arith.constant 0.000000e+00 : f32
    %75 = vector.broadcast %cst_34 : f32 to vector<128x9xf32>
    %76 = vector.broadcast %cst_35 : f32 to vector<128x9xf32>
    %77 = arith.select %74, %75, %76 : vector<128x9xi1>, vector<128x9xf32>
    %c0_36 = arith.constant 0 : index
    %c896 = arith.constant 896 : index
    %78 = vector.load %arg3[%c0_36, %c896] : memref<8x1024xf32, #tpu.memory_space<vmem>>, vector<8x128xf32>
    %79 = arith.mulf %78, %0 : vector<8x128xf32>
    %cst_37 = arith.constant dense<0.000000e+00> : vector<8x9xf32>
    %80 = tpu.matmul %79, %77, %cst_37 {dimension_numbers = #tpu.dot_dimension_numbers<[1], [0], [0], [1], [0, 0, 1, 1], [], []>} : vector<8x128xf32>, vector<128x9xf32>, vector<8x9xf32> -> vector<8x9xf32>
    %81 = arith.addf %72, %80 : vector<8x9xf32>
    %cst_38 = arith.constant 0.000000e+00 : f32
    %82 = vector.broadcast %cst_38 : f32 to vector<8x9xf32>
    %83 = arith.minimumf %81, %82 : vector<8x9xf32>
    %84 = math.absf %81 : vector<8x9xf32>
    %cst_39 = arith.constant 0.000000e+00 : f32
    %85 = vector.broadcast %cst_39 : f32 to vector<8x9xf32>
    %86 = arith.subf %85, %84 : vector<8x9xf32>
    %87 = math.exp %86 : vector<8x9xf32>
    %cst_40 = arith.constant 1.000000e+00 : f32
    %88 = vector.broadcast %cst_40 : f32 to vector<8x9xf32>
    %89 = arith.addf %88, %87 : vector<8x9xf32>
    %90 = math.log %89 : vector<8x9xf32>
    %91 = arith.subf %83, %90 : vector<8x9xf32>
    %c8_i32_41 = arith.constant 8 : i32
    %92 = arith.muli %arg0, %c8_i32_41 : i32
    %93 = tpu.iota {dimensions = array<i32: 0>} : vector<8x9xi32>
    %94 = vector.broadcast %92 : i32 to vector<8x9xi32>
    %95 = arith.addi %94, %93 : vector<8x9xi32>
    %c8_i32_42 = arith.constant 8 : i32
    %96 = vector.broadcast %c8_i32_42 : i32 to vector<8x9xi32>
    %97 = arith.cmpi slt, %95, %96 : vector<8x9xi32>
    %cst_43 = arith.constant 0.000000e+00 : f32
    %98 = vector.broadcast %cst_43 : f32 to vector<8x9xf32>
    %99 = arith.select %97, %91, %98 : vector<8x9xi1>, vector<8x9xf32>
    %cst_44 = arith.constant dense<0.000000e+00> : vector<9xf32>
    %100 = vector.multi_reduction <add>, %99, %cst_44 [0] : vector<8x9xf32> to vector<9xf32>
    %101 = vector.shape_cast %100 : vector<9xf32> to vector<1x9xf32>
    %c0_45 = arith.constant 0 : index
    %c0_46 = arith.constant 0 : index
    %c0_47 = arith.constant 0 : index
    %102 = vector.load %arg4[%c0_45, %c0_46, %c0_47] : memref<1x1x9xf32, #tpu.memory_space<vmem>>, vector<1x1x9xf32>
    %103 = vector.shape_cast %102 : vector<1x1x9xf32> to vector<1x9xf32>
    %104 = vector.shape_cast %101 : vector<1x9xf32> to vector<1x1x9xf32>
    tpu.vector_store %arg4[%c0_45, %c0_46, %c0_47], %104 {strides = array<i32>} : memref<1x1x9xf32, #tpu.memory_space<vmem>>, vector<1x1x9xf32>,
    return
  }
  func.func @transform_0(%arg0: i32) -> (i32, i32) {
    %c0_i32 = arith.constant 0 : i32
    %c0_i32_0 = arith.constant 0 : i32
    return %arg0, %c0_i32 : i32, i32
  }
  func.func @transform_1(%arg0: i32) -> (i32, i32) {
    %c0_i32 = arith.constant 0 : i32
    %c0_i32_0 = arith.constant 0 : i32
    return %arg0, %c0_i32 : i32, i32
  }
  func.func @transform_2(%arg0: i32) -> (i32, i32) {
    %c0_i32 = arith.constant 0 : i32
    %c0_i32_0 = arith.constant 0 : i32
    return %arg0, %c0_i32 : i32, i32
  }
  func.func @transform_3(%arg0: i32) -> (i32, i32, i32) {
    %c0_i32 = arith.constant 0 : i32
    %c0_i32_0 = arith.constant 0 : i32
    %c0_i32_1 = arith.constant 0 : i32
    return %arg0, %c0_i32, %c0_i32_0 : i32, i32, i32
  }
}

</mosaic_0001>

<bundles_post_ra>
// kernel: tpu_custom_call.1
= control target key start
LH: loop header
LB: loop body
LE: loop exit
PB: predicated region body
PF: predicated region fallthrough
CT: control target
= control target key end

     0   :  { %8 = vsyncpa [#allocation3], 0  ;;  %s2151_s0 = inlined_call_operand.hbm [shape: f32[8,128], index: 0, kind: input, shape index: {}]   ;;  %s2152_s1 = inlined_call_operand.hbm [shape: f32[8,128], index: 1, kind: input, shape index: {}]   ;;  %s2153_s2 = inlined_call_operand.hbm [shape: f32[8,1024], index: 2, kind: input, shape index: {}]   ;;  %s2154_s3 = inlined_call_operand.hbm [shape: f32[1,1,9], index: 3, kind: output, shape index: {}]  }
   0x1   :  { %9 = vsyncpa [#allocation6], 0 }
   0x2   :  { %10 = vsyncpa [#allocation4], 0  ;;  %s1718_s12 = smov [#allocation5]   ;;  %s1719_s14 = smov [#allocation2]  }
   0x3   :  { %s27_s13 = sshll.u32 %s1718_s12, 4  ;;  %s17_s15 = sshll.u32 %s1719_s14, 4  ;;  %s28_s13 = int_to_ptr.vmem [resolvable:$true] %s27_s13  ;;  %s18_s15 = int_to_ptr.vmem [resolvable:$true] %s17_s15 }
   0x4   :  { %s1624_s18 = scalar_lea.hbm %s2152_s1, 128 }
   0x5   :  { %p1625_p0 = scmp.ne.s32.totalorder %s2152_s1, %s1624_s18  ;;  %p1628_p1 = scmp.lt.u32.totalorder %s1624_s18, %s2152_s1 }
   0x7   :  { %p1630_p2 = pnand %p1628_p1, %p1625_p0 }
   0x9   :  { %1633 = shalt.err (!%p1630_p2)
}
   0xa   :  { %s1634_s23 = scalar_lea.vmem %s28_s13, 128  ;;  %p1639_p4 = scmp.lt.s32.totalorder %s28_s13, %s28_s13 }
   0xb   :  { %p1635_p3 = scmp.ne.s32.totalorder %s28_s13, %s1634_s23  ;;  %p1640_p5 = scmp.lt.s32.totalorder %s1634_s23, %s1634_s23 }
   0xd   :  { %p1641_p6 = por %p1640_p5, %p1639_p4 }
   0xf   :  { %p1642_p7 = pnand %p1641_p6, %p1635_p3 }
  0x11   :  { %1645 = shalt.err (!%p1642_p7)
}
  0x12   :  { %30 = dma.hbm_to_vmem [thread:$0]  %s2152_s1, 128, %s28_s13, [#allocation6]  }
  0x13   :  { %s1646_s28 = scalar_lea.hbm %s2151_s0, 128 }
  0x14   :  { %p1647_p8 = scmp.ne.s32.totalorder %s2151_s0, %s1646_s28  ;;  %p1650_p9 = scmp.lt.u32.totalorder %s1646_s28, %s2151_s0 }
  0x16   :  { %p1652_p10 = pnand %p1650_p9, %p1647_p8 }
  0x18   :  { %1655 = shalt.err (!%p1652_p10)
}
  0x19   :  { %s1656_s6 = scalar_lea.vmem %s18_s15, 128  ;;  %p1661_p12 = scmp.lt.s32.totalorder %s18_s15, %s18_s15 }
  0x1a   :  { %p1657_p11 = scmp.ne.s32.totalorder %s18_s15, %s1656_s6  ;;  %p1662_p13 = scmp.lt.s32.totalorder %s1656_s6, %s1656_s6 }
  0x1c   :  { %p1663_p0 = por %p1662_p13, %p1661_p12 }
  0x1e   :  { %p1664_p1 = pnand %p1663_p0, %p1657_p11 }
  0x20   :  { %1667 = shalt.err (!%p1664_p1)
}
  0x21   :  { %20 = dma.hbm_to_vmem [thread:$0]  %s2151_s0, 128, %s18_s15, [#allocation3]  }
  0x22   :  { %s1720_s8 = smov [#allocation7]   ;;  %s1668_s12 = scalar_lea.hbm %s2153_s2, 1024 }
  0x23   :  { %s37_s9 = sshll.u32 %s1720_s8, 4  ;;  %p1669_p2 = scmp.ne.s32.totalorder %s2153_s2, %s1668_s12  ;;  %s38_s9 = int_to_ptr.vmem [resolvable:$true] %s37_s9 }
  0x24   :  { %p1672_p3 = scmp.lt.u32.totalorder %s1668_s12, %s2153_s2 }
  0x26   :  { %p1674_p4 = pnand %p1672_p3, %p1669_p2 }
  0x28   :  { %1677 = shalt.err (!%p1674_p4)
}
  0x29   :  { %s1678_s18 = scalar_lea.vmem %s38_s9, 1024  ;;  %p1683_p6 = scmp.lt.s32.totalorder %s38_s9, %s38_s9 }
  0x2a   :  { %p1679_p5 = scmp.ne.s32.totalorder %s38_s9, %s1678_s18  ;;  %p1684_p7 = scmp.lt.s32.totalorder %s1678_s18, %s1678_s18 }
  0x2c   :  { %p1685_p8 = por %p1684_p7, %p1683_p6 }
  0x2e   :  { %p1686_p9 = pnand %p1685_p8, %p1679_p5 }
  0x30   :  { %1689 = shalt.err (!%p1686_p9)
}
  0x31   :  { %40 = dma.hbm_to_vmem [thread:$0]  %s2153_s2, 1024, %s38_s9, [#allocation6]  }
  0x32   :  { %1712 = dma.done.wait [#allocation3], 128  }
  0x33   :  { %1713 = vsyncadd [#allocation3], 4294967168  ;;  %v51_v0 = vlaneseq }
  0x34   :  { %1714 = dma.done.wait [#allocation6], 1152  }
  0x35   :  { %1715 = vsyncadd [#allocation6], 4294966144  ;;  %v1721_v1 = vmov 0.0|0.0   ;;  %v1785_v2 = vand.u32 127, %v51_v0  ;;  %vm1722_vm0 = vmmov 0   ;;  %v1723_v3 = vmov 0.0  }
  0x36   :  { %1380 = vmatprep.subr.bf16.mxu1 %v1721_v1  ;;  %1476 = vmatprep.subr.bf16.mxu0 %v1721_v1  ;;  %v1724_v5 = vmov -1.0|-1.0   ;;  %v1852_v7 = vld [vmem:[#allocation2] sm:$0xff]  ;;  %v59_v8 = vld [vmem:[#allocation7] sm:$0xff]  ;;  %v353_v9 = vld [vmem:[#allocation7 + $0x18] sm:$0xff]  ;;  %s1726_s2 = smov [#allocation8]  }
  0x37   :  { %1097 = vmatprep.mubr.msk.f32.mxu1 %vm1722_vm0, %v1723_v3  ;;  %1237 = vmatprep.mubr.msk.f32.mxu0 %vm1722_vm0, %v1723_v3  ;;  %vm57_vm1 = vcmp.eq.s32.totalorder %v1785_v2, 1  ;;  %vm351_vm2 = vcmp.eq.s32.totalorder %v1785_v2, 4  ;;  %vm53_vm5 = vcmp.eq.s32.totalorder %v1785_v2, 0  ;;  %v60_v10 = vmul.f32 %v59_v8, %v1852_v7  ;;  %v55_v15 = vld [vmem:[#allocation5] sm:$0xff]  ;;  %v428_v16 = vld [vmem:[#allocation7 + $0x20] sm:$0xff]  ;;  %v203_v21 = vld [vmem:[#allocation7 + $0x8] sm:$0xff] }
  0x38   :  { %vm1793_vm3 = vmpackc.low %vm57_vm1, %vm57_vm1  ;;  %vm426_vm6 = vcmp.eq.s32.totalorder %v1785_v2, 5  ;;  %v354_v11 = vmul.f32 %v353_v9, %v1852_v7  ;;  %v1725_v14 = vmov 1.0|1.0   ;;  %vm201_vm9 = vcmp.eq.s32.totalorder %v1785_v2, 2  ;;  %v503_v22 = vld [vmem:[#allocation7 + $0x28] sm:$0xff]  ;;  %v278_v27 = vld [vmem:[#allocation7 + $0x10] sm:$0xff] }
  0x39   :  { %1382 = vmatpush3.bf16.msk.msra.mxu1 %vm1793_vm3, %v1724_v5  ;;  %vm1800_vm4 = vmpackc.low %vm351_vm2, %vm351_vm2  ;;  %v56_v17 = vmul.f32 %v55_v15, %v1852_v7  ;;  %vm501_vm10 = vcmp.eq.s32.totalorder %v1785_v2, 6  ;;  %v429_v18 = vmul.f32 %v428_v16, %v1852_v7  ;;  %vm276_vm13 = vcmp.eq.s32.totalorder %v1785_v2, 3  ;;  %v578_v28 = vld [vmem:[#allocation7 + $0x30] sm:$0xff]  ;;  %v653_v32 = vld [vmem:[#allocation7 + $0x38] sm:$0xff]  ;;  %s758_s19 = sshll.u32 %s1726_s2, 4  ;;  %s759_s19 = int_to_ptr.vmem [resolvable:$true] %s758_s19 }
  0x3a   :  { %1478 = vmatpush3.bf16.msk.msra.mxu0 %vm1800_vm4, %v1724_v5  ;;  %1383 = vmatprep.subr.bf16.mxu1 %v1721_v1  ;;  %vm1870_vm7 = vmpackc.low %vm53_vm5, %vm53_vm5  ;;  %v204_v23 = vmul.f32 %v203_v21, %v1852_v7  ;;  %vm576_vm14 = vcmp.eq.s32.totalorder %v1785_v2, 7  ;;  %v504_v24 = vmul.f32 %v503_v22, %v1852_v7  ;;  %v279_v29 = vmul.f32 %v278_v27, %v1852_v7  ;;  %s1690_s20 = scalar_lea.vmem %s759_s19, 16  ;;  %s1694_s21 = scalar_lea.vmem %s759_s19, 32 }
  0x3b   :  { %1479 = vmatprep.subr.bf16.mxu0 %v1721_v1  ;;  %vm1875_vm8 = vmpackc.low %vm426_vm6, %vm426_vm6  ;;  %vm651_vm2 = vcmp.eq.s32.totalorder %v1785_v2, 8  ;;  %v579_v30 = vmul.f32 %v578_v28, %v1852_v7  ;;  %v654_v33 = vmul.f32 %v653_v32, %v1852_v7  ;;  %p1691_p10 = scmp.ne.s32.totalorder %s759_s19, %s1690_s20  ;;  %p1695_p11 = scmp.lt.s32.totalorder %s759_s19, %s759_s19 }
  0x3c   :  { %vm1942_vm11 = vmpackc.low %vm201_vm9, %vm201_vm9  ;;  %p1696_p12 = scmp.lt.s32.totalorder %s1694_s21, %s1690_s20 }
  0x3d   :  { %1385 = vmatpush3.bf16.msk.msra.mxu1 %vm1793_vm3, %v1724_v5  ;;  %vm1947_vm12 = vmpackc.low %vm501_vm10, %vm501_vm10 }
  0x3e   :  { %1481 = vmatpush3.bf16.msk.msra.mxu0 %vm1800_vm4, %v1724_v5  ;;  %1386 = vmatprep.subr.bf16.mxu1 %v1721_v1  ;;  %vm2022_vm15 = vmpackc.low %vm276_vm13, %vm276_vm13  ;;  %p1697_p13 = por %p1696_p12, %p1695_p11 }
  0x3f   :  { %1482 = vmatprep.subr.bf16.mxu0 %v1721_v1  ;;  %vm2027_vm1 = vmpackc.low %vm576_vm14, %vm576_vm14 }
  0x40   :  { %p1698_p0 = pnand %p1697_p13, %p1691_p10 }
  0x41   :  { %1388 = vmatpush3.bf16.msk.msra.mxu1 %vm1793_vm3, %v1724_v5 }
  0x42   :  { %1484 = vmatpush3.bf16.msk.msra.mxu0 %vm1800_vm4, %v1724_v5  ;;  %1389 = vmatprep.subr.bf16.mxu1 %v1721_v1 }
  0x43   :  { %1485 = vmatprep.subr.bf16.mxu0 %v1721_v1 }
  0x45   :  { %1391 = vmatpush3.bf16.msk.msra.mxu1 %vm1793_vm3, %v1724_v5 }
  0x46   :  { %1487 = vmatpush3.bf16.msk.msra.mxu0 %vm1800_vm4, %v1724_v5  ;;  %1392 = vmatprep.subr.bf16.mxu1 %v1721_v1 }
  0x47   :  { %1488 = vmatprep.subr.bf16.mxu0 %v1721_v1 }
  0x49   :  { %1394 = vmatpush3.bf16.msk.msra.mxu1 %vm1793_vm3, %v1724_v5 }
  0x4a   :  { %1490 = vmatpush3.bf16.msk.msra.mxu0 %vm1800_vm4, %v1724_v5  ;;  %1395 = vmatprep.subr.bf16.mxu1 %v1721_v1 }
  0x4b   :  { %1491 = vmatprep.subr.bf16.mxu0 %v1721_v1 }
  0x4d   :  { %1397 = vmatpush3.bf16.msk.msra.mxu1 %vm1793_vm3, %v1724_v5 }
  0x4e   :  { %1493 = vmatpush3.bf16.msk.msra.mxu0 %vm1800_vm4, %v1724_v5  ;;  %1398 = vmatprep.subr.bf16.mxu1 %v1721_v1 }
  0x4f   :  { %1494 = vmatprep.subr.bf16.mxu0 %v1721_v1 }
  0x51   :  { %1400 = vmatpush3.bf16.msk.msra.mxu1 %vm1793_vm3, %v1724_v5 }
  0x52   :  { %1496 = vmatpush3.bf16.msk.msra.mxu0 %vm1800_vm4, %v1724_v5  ;;  %1401 = vmatprep.subr.bf16.mxu1 %v1721_v1 }
  0x53   :  { %1497 = vmatprep.subr.bf16.mxu0 %v1721_v1 }
  0x55   :  { %1403 = vmatpush3.bf16.msk.msra.mxu1 %vm1793_vm3, %v1724_v5  ;;  %vm2101_vm3 = vmpackc.low %vm651_vm2, %vm651_vm2 }
  0x56   :  { %1499 = vmatpush3.bf16.msk.msra.mxu0 %vm1800_vm4, %v1724_v5  ;;  %1404 = vmatprep.subr.bf16.mxu1 %v1721_v1  ;;  %vm750_vm4 = vcmask 65536  }
  0x57   :  { %1500 = vmatprep.subr.bf16.mxu0 %v1721_v1 }
  0x58   :  { %1098 = vmatmul.mubr.f32.vlgmr.msra.gmra.mrb[0].mxu1 %v60_v10 }
  0x59   :  { %1406 = vmatpush3.bf16.msk.msra.mxu1 %vm1870_vm7, %v1725_v14  ;;  %1238 = vmatmul.mubr.f32.vlgmr.msra.gmra.mrb[0].mxu0 %v354_v11 }
  0x5a   :  { %1502 = vmatpush3.bf16.msk.msra.mxu0 %vm1875_vm8, %v1724_v5  ;;  %1407 = vmatprep.subr.bf16.mxu1 %v1721_v1 }
  0x5b   :  { %1503 = vmatprep.subr.bf16.mxu0 %v1721_v1  ;;  %1132 = vmatprep.mubr.msk.f32.mxu1 %vm1722_vm0, %v1723_v3 }
  0x5c   :  { %1272 = vmatprep.mubr.msk.f32.mxu0 %vm1722_vm0, %v1723_v3 }
  0x5d   :  { %1409 = vmatpush3.bf16.msk.msra.mxu1 %vm1870_vm7, %v1725_v14 }
  0x5e   :  { %1505 = vmatpush3.bf16.msk.msra.mxu0 %vm1875_vm8, %v1724_v5  ;;  %1410 = vmatprep.subr.bf16.mxu1 %v1721_v1 }
  0x5f   :  { %1506 = vmatprep.subr.bf16.mxu0 %v1721_v1 }
  0x61   :  { %1412 = vmatpush3.bf16.msk.msra.mxu1 %vm1870_vm7, %v1725_v14 }
  0x62   :  { %1508 = vmatpush3.bf16.msk.msra.mxu0 %vm1875_vm8, %v1724_v5  ;;  %1413 = vmatprep.subr.bf16.mxu1 %v1721_v1 }
  0x63   :  { %1509 = vmatprep.subr.bf16.mxu0 %v1721_v1 }
  0x65   :  { %1415 = vmatpush3.bf16.msk.msra.mxu1 %vm1870_vm7, %v1725_v14 }
  0x66   :  { %1511 = vmatpush3.bf16.msk.msra.mxu0 %vm1875_vm8, %v1724_v5  ;;  %1416 = vmatprep.subr.bf16.mxu1 %v1721_v1 }
  0x67   :  { %1512 = vmatprep.subr.bf16.mxu0 %v1721_v1 }
  0x69   :  { %1418 = vmatpush3.bf16.msk.msra.mxu1 %vm1870_vm7, %v1725_v14 }
  0x6a   :  { %1514 = vmatpush3.bf16.msk.msra.mxu0 %vm1875_vm8, %v1724_v5  ;;  %1419 = vmatprep.subr.bf16.mxu1 %v1721_v1 }
  0x6b   :  { %1515 = vmatprep.subr.bf16.mxu0 %v1721_v1 }
  0x6d   :  { %1421 = vmatpush3.bf16.msk.msra.mxu1 %vm1870_vm7, %v1725_v14 }
  0x6e   :  { %1517 = vmatpush3.bf16.msk.msra.mxu0 %vm1875_vm8, %v1724_v5  ;;  %1422 = vmatprep.subr.bf16.mxu1 %v1721_v1 }
  0x6f   :  { %1518 = vmatprep.subr.bf16.mxu0 %v1721_v1 }
  0x71   :  { %1424 = vmatpush3.bf16.msk.msra.mxu1 %vm1870_vm7, %v1725_v14 }
  0x72   :  { %1520 = vmatpush3.bf16.msk.msra.mxu0 %vm1875_vm8, %v1724_v5  ;;  %1425 = vmatprep.subr.bf16.mxu1 %v1721_v1 }
  0x73   :  { %1521 = vmatprep.subr.bf16.mxu0 %v1721_v1 }
  0x75   :  { %1427 = vmatpush3.bf16.msk.msra.mxu1 %vm1870_vm7, %v1725_v14 }
  0x76   :  { %1523 = vmatpush3.bf16.msk.msra.mxu0 %vm1875_vm8, %v1724_v5  ;;  %1428 = vmatprep.subr.bf16.mxu1 %v1721_v1 }
  0x77   :  { %1524 = vmatprep.subr.bf16.mxu0 %v1721_v1 }
  0x78   :  { %1133 = vmatmul.mubr.f32.vlgmr.msra.gmra.mrb[0].mxu1 %v56_v17 }
  0x79   :  { %1430 = vmatpush3.bf16.msk.msra.mxu1 %vm1942_vm11, %v1724_v5  ;;  %1273 = vmatmul.mubr.f32.vlgmr.msra.gmra.mrb[0].mxu0 %v429_v18 }
  0x7a   :  { %1526 = vmatpush3.bf16.msk.msra.mxu0 %vm1947_vm12, %v1724_v5  ;;  %1431 = vmatprep.subr.bf16.mxu1 %v1721_v1 }
  0x7b   :  { %1527 = vmatprep.subr.bf16.mxu0 %v1721_v1  ;;  %1167 = vmatprep.mubr.msk.f32.mxu1 %vm1722_vm0, %v1723_v3 }
  0x7c   :  { %1307 = vmatprep.mubr.msk.f32.mxu0 %vm1722_vm0, %v1723_v3 }
  0x7d   :  { %1433 = vmatpush3.bf16.msk.msra.mxu1 %vm1942_vm11, %v1724_v5 }
  0x7e   :  { %1529 = vmatpush3.bf16.msk.msra.mxu0 %vm1947_vm12, %v1724_v5  ;;  %1434 = vmatprep.subr.bf16.mxu1 %v1721_v1 }
  0x7f   :  { %1530 = vmatprep.subr.bf16.mxu0 %v1721_v1 }
  0x81   :  { %1436 = vmatpush3.bf16.msk.msra.mxu1 %vm1942_vm11, %v1724_v5 }
  0x82   :  { %1532 = vmatpush3.bf16.msk.msra.mxu0 %vm1947_vm12, %v1724_v5  ;;  %1437 = vmatprep.subr.bf16.mxu1 %v1721_v1 }
  0x83   :  { %1533 = vmatprep.subr.bf16.mxu0 %v1721_v1 }
  0x85   :  { %1439 = vmatpush3.bf16.msk.msra.mxu1 %vm1942_vm11, %v1724_v5 }
  0x86   :  { %1535 = vmatpush3.bf16.msk.msra.mxu0 %vm1947_vm12, %v1724_v5  ;;  %1440 = vmatprep.subr.bf16.mxu1 %v1721_v1 }
  0x87   :  { %1536 = vmatprep.subr.bf16.mxu0 %v1721_v1 }
  0x89   :  { %1442 = vmatpush3.bf16.msk.msra.mxu1 %vm1942_vm11, %v1724_v5 }
  0x8a   :  { %1538 = vmatpush3.bf16.msk.msra.mxu0 %vm1947_vm12, %v1724_v5  ;;  %1443 = vmatprep.subr.bf16.mxu1 %v1721_v1 }
  0x8b   :  { %1539 = vmatprep.subr.bf16.mxu0 %v1721_v1 }
  0x8d   :  { %1445 = vmatpush3.bf16.msk.msra.mxu1 %vm1942_vm11, %v1724_v5 }
  0x8e   :  { %1541 = vmatpush3.bf16.msk.msra.mxu0 %vm1947_vm12, %v1724_v5  ;;  %1446 = vmatprep.subr.bf16.mxu1 %v1721_v1 }
  0x8f   :  { %1542 = vmatprep.subr.bf16.mxu0 %v1721_v1 }
  0x91   :  { %1448 = vmatpush3.bf16.msk.msra.mxu1 %vm1942_vm11, %v1724_v5 }
  0x92   :  { %1544 = vmatpush3.bf16.msk.msra.mxu0 %vm1947_vm12, %v1724_v5  ;;  %1449 = vmatprep.subr.bf16.mxu1 %v1721_v1 }
  0x93   :  { %1545 = vmatprep.subr.bf16.mxu0 %v1721_v1 }
  0x95   :  { %1451 = vmatpush3.bf16.msk.msra.mxu1 %vm1942_vm11, %v1724_v5 }
  0x96   :  { %1547 = vmatpush3.bf16.msk.msra.mxu0 %vm1947_vm12, %v1724_v5  ;;  %1452 = vmatprep.subr.bf16.mxu1 %v1721_v1 }
  0x97   :  { %1548 = vmatprep.subr.bf16.mxu0 %v1721_v1 }
  0x98   :  { %1168 = vmatmul.mubr.f32.vlgmr.msra.gmra.mrb[0].mxu1 %v204_v23 }
  0x99   :  { %1454 = vmatpush3.bf16.msk.msra.mxu1 %vm2022_vm15, %v1724_v5  ;;  %1308 = vmatmul.mubr.f32.vlgmr.msra.gmra.mrb[0].mxu0 %v504_v24 }
  0x9a   :  { %1550 = vmatpush3.bf16.msk.msra.mxu0 %vm2027_vm1, %v1724_v5  ;;  %1455 = vmatprep.subr.bf16.mxu1 %v1721_v1 }
  0x9b   :  { %1551 = vmatprep.subr.bf16.mxu0 %v1721_v1  ;;  %1202 = vmatprep.mubr.msk.f32.mxu1 %vm1722_vm0, %v1723_v3 }
  0x9c   :  { %1342 = vmatprep.mubr.msk.f32.mxu0 %vm1722_vm0, %v1723_v3 }
  0x9d   :  { %1457 = vmatpush3.bf16.msk.msra.mxu1 %vm2022_vm15, %v1724_v5 }
  0x9e   :  { %1553 = vmatpush3.bf16.msk.msra.mxu0 %vm2027_vm1, %v1724_v5  ;;  %1458 = vmatprep.subr.bf16.mxu1 %v1721_v1 }
  0x9f   :  { %1554 = vmatprep.subr.bf16.mxu0 %v1721_v1 }
  0xa1   :  { %1460 = vmatpush3.bf16.msk.msra.mxu1 %vm2022_vm15, %v1724_v5 }
  0xa2   :  { %1556 = vmatpush3.bf16.msk.msra.mxu0 %vm2027_vm1, %v1724_v5  ;;  %1461 = vmatprep.subr.bf16.mxu1 %v1721_v1 }
  0xa3   :  { %1557 = vmatprep.subr.bf16.mxu0 %v1721_v1 }
  0xa5   :  { %1463 = vmatpush3.bf16.msk.msra.mxu1 %vm2022_vm15, %v1724_v5 }
  0xa6   :  { %1559 = vmatpush3.bf16.msk.msra.mxu0 %vm2027_vm1, %v1724_v5  ;;  %1464 = vmatprep.subr.bf16.mxu1 %v1721_v1 }
  0xa7   :  { %1560 = vmatprep.subr.bf16.mxu0 %v1721_v1 }
  0xa9   :  { %1466 = vmatpush3.bf16.msk.msra.mxu1 %vm2022_vm15, %v1724_v5 }
  0xaa   :  { %1562 = vmatpush3.bf16.msk.msra.mxu0 %vm2027_vm1, %v1724_v5  ;;  %1467 = vmatprep.subr.bf16.mxu1 %v1721_v1 }
  0xab   :  { %1563 = vmatprep.subr.bf16.mxu0 %v1721_v1 }
  0xad   :  { %1469 = vmatpush3.bf16.msk.msra.mxu1 %vm2022_vm15, %v1724_v5 }
  0xae   :  { %1565 = vmatpush3.bf16.msk.msra.mxu0 %vm2027_vm1, %v1724_v5  ;;  %1470 = vmatprep.subr.bf16.mxu1 %v1721_v1 }
  0xaf   :  { %1566 = vmatprep.subr.bf16.mxu0 %v1721_v1 }
  0xb1   :  { %1472 = vmatpush3.bf16.msk.msra.mxu1 %vm2022_vm15, %v1724_v5 }
  0xb2   :  { %1568 = vmatpush3.bf16.msk.msra.mxu0 %vm2027_vm1, %v1724_v5  ;;  %1473 = vmatprep.subr.bf16.mxu1 %v1721_v1 }
  0xb3   :  { %1569 = vmatprep.subr.bf16.mxu0 %v1721_v1 }
  0xb5   :  { %1475 = vmatpush3.bf16.msk.msra.mxu1 %vm2022_vm15, %v1724_v5 }
  0xb6   :  { %1571 = vmatpush3.bf16.msk.msra.mxu0 %vm2027_vm1, %v1724_v5 }
  0xb7   :  { %1572 = vmatprep.subr.bf16.mxu0 %v1721_v1 }
  0xb8   :  { %1203 = vmatmul.mubr.f32.vlgmr.msra.gmra.mrb[0].mxu1 %v279_v29 }
  0xb9   :  { %1343 = vmatmul.mubr.f32.vlgmr.msra.gmra.mrb[0].mxu0 %v579_v30 }
  0xba   :  { %1574 = vmatpush3.bf16.msk.msra.mxu0 %vm2101_vm3, %v1724_v5  ;;  %1377 = vmatprep.mubr.msk.f32.mxu0 %vm1722_vm0, %v1723_v3  ;;  %vm742_vm0 = vcmask 72704  }
  0xbb   :  { %1575 = vmatprep.subr.bf16.mxu0 %v1721_v1 }
  0xbe   :  { %1577 = vmatpush3.bf16.msk.msra.mxu0 %vm2101_vm3, %v1724_v5 }
  0xbf   :  { %1578 = vmatprep.subr.bf16.mxu0 %v1721_v1 }
  0xc2   :  { %1580 = vmatpush3.bf16.msk.msra.mxu0 %vm2101_vm3, %v1724_v5 }
  0xc3   :  { %1581 = vmatprep.subr.bf16.mxu0 %v1721_v1 }
  0xc6   :  { %1583 = vmatpush3.bf16.msk.msra.mxu0 %vm2101_vm3, %v1724_v5 }
  0xc7   :  { %1584 = vmatprep.subr.bf16.mxu0 %v1721_v1 }
  0xca   :  { %1586 = vmatpush3.bf16.msk.msra.mxu0 %vm2101_vm3, %v1724_v5 }
  0xcb   :  { %1587 = vmatprep.subr.bf16.mxu0 %v1721_v1 }
  0xce   :  { %1589 = vmatpush3.bf16.msk.msra.mxu0 %vm2101_vm3, %v1724_v5 }
  0xcf   :  { %1590 = vmatprep.subr.bf16.mxu0 %v1721_v1 }
  0xd2   :  { %1592 = vmatpush3.bf16.msk.msra.mxu0 %vm2101_vm3, %v1724_v5 }
  0xd3   :  { %1593 = vmatprep.subr.bf16.mxu0 %v1721_v1 }
  0xd6   :  { %1595 = vmatpush3.bf16.msk.msra.mxu0 %vm2101_vm3, %v1724_v5 }
  0xd9   :  { %1378 = vmatmul.mubr.f32.vlgmr.msra.gmra.mrb[0].mxu0 %v654_v33 }
 0x18b   :  { %v346_v34 = vpop.f32.mrb[0].mxu1 }
 0x18c   :  { %v1204_v35 = vpop.f32.mrb[1].mxu1 }
 0x1ac   :  { %v721_v36 = vpop.f32.mrb[0].mxu0 }
 0x1ad   :  { %v1596_v37 = vadd.f32 %v721_v36, %v346_v34  ;;  %v1379_v38 = vpop.f32.mrb[1].mxu0 }
 0x1af   :  { %v727_v39 = vand.u32 2147483647, %v1596_v37  ;;  %v726_v45 = vmin.f32 %v1596_v37, 0.0 }
 0x1b1   :  { %v728_v40 = vsub.f32 0.0, %v727_v39 }
 0x1b3   :  { %v729_v41 = vmul.f32 1.442695, %v728_v40 }
 0x1b5   :  { %1620 = vpow2.f32 %v729_v41 }
 0x1bf   :  { %v1621_v42 = vpop.eup %1620 }
 0x1c0   :  { %v731_v43 = vadd.f32 1.0, %v1621_v42 }
 0x1c2   :  { %1622 = vlog2.f32 %v731_v43 }
 0x1cc   :  { %v1623_v44 = vpop.eup %1622 }
 0x1cd   :  { %v733_v46 = vmul.f32 0.6931472, %v1623_v44 }
 0x1cf   :  { %v734_v47 = vsub.f32 %v726_v45, %v733_v46 }
 0x1d1   :  { %v743_v48 = vsel %vm742_vm0, %v734_v47, 0.0 }
 0x1d2   :  { %v744_v49 = vrot.slane %v743_v48, 4 }
 0x1d4   :  { %v745_v50 = vadd.f32 %v744_v49, %v743_v48 }
 0x1d6   :  { %v746_v51 = vrot.slane %v745_v50, 2 }
 0x1d8   :  { %v747_v52 = vadd.f32 %v746_v51, %v745_v50 }
 0x1da   :  { %v748_v53 = vrot.slane %v747_v52, 1 }
 0x1dc   :  { %v749_v54 = vadd.f32 %v748_v53, %v747_v52 }
 0x1de   :  { %751 = vst.msk [vmem:[#allocation8] sm:$0x1] %vm750_vm4, %v749_v54 }
 0x1df   :  { %1701 = shalt.err (!%p1698_p0)
}
 0x1e0   :  { %s1702_s24 = scalar_lea.hbm %s2154_s3, 16 }
 0x1e1   :  { %p1703_p1 = scmp.ne.s32.totalorder %s2154_s3, %s1702_s24  ;;  %p1706_p2 = scmp.lt.u32.totalorder %s1702_s24, %s2154_s3 }
 0x1e3   :  { %p1708_p3 = pnand %p1706_p2, %p1703_p1 }
 0x1e5   :  { %1711 = shalt.err (!%p1708_p3)
}
 0x1e6   :  { %761 = dma.vmem_to_hbm [thread:$0]  %s759_s19, 16, %s2154_s3, [#allocation4]  }
 0x1e7   :  { %1716 = dma.done.wait [#allocation4], 16  }
 0x1e8   :  { %1717 = vsyncadd [#allocation4], 4294967280 }
 0x1e9   :  { %765 = vsyncpa [#allocation3], 1 }
 0x1ea   :  { %766 = vsyncpa [#allocation6], 1 }
 0x1eb   :  { %767 = vsyncpa [#allocation4], 1 }

</bundles_post_ra>
